<compile_context>
chip_gen: v5e
topology: v5e:2x2
jax: 0.10.0
libtpu: 0.0.40
codegen_flags: <defaults>
</compile_context>

<pallas_src>
import functools

import numpy as np
import jax
import jax.numpy as jnp
from jax.experimental import pallas as pl
from jax.experimental.pallas import tpu as pltpu


def _round_up(x, m):
    return ((x + m - 1) // m) * m


def _gaussian_derivative_filters(kernel_size, sigmas):
    """Deterministic separable 1D Gaussian-derivative filters per sigma.

    Returns a list (len S) of tuples (g, g1, g2) of float32 numpy arrays of
    length K.  The 2D kernels of the module are outer products:
        xx = g (y) x g2 (x),   yy = g2 (y) x g (x),   xy = g1 (y) x g1 (x).
    """
    K = int(kernel_size)
    t = np.arange(K, dtype=np.float64) - (K - 1) / 2.0
    filts = []
    for sigma in sigmas:
        s = float(sigma)
        g = np.exp(-(t ** 2) / (2.0 * s ** 2)) / (s * np.sqrt(2.0 * np.pi))
        g1 = (-t / s ** 2) * g                       # first derivative
        g2 = ((t ** 2 - s ** 2) / s ** 4) * g        # second derivative
        filts.append((g.astype(np.float32),
                      g1.astype(np.float32),
                      g2.astype(np.float32)))
    return filts


def _col_toeplitz(filt, H, Hd, Hp):
    """A (Hd, Hp) with A[h, h+k] = filt[k] for h < H  (rows >= H stay zero)."""
    A = np.zeros((Hd, Hp), np.float32)
    rows = np.arange(H)
    for k in range(len(filt)):
        A[rows, rows + k] = filt[k]
    return A


def _row_toeplitz(filt, Wg):
    """R (Wg, Wg) with R[w+k, w] = filt[k]; out-of-range taps stay zero
    (those partial output columns are discarded by the unpacking)."""
    R = np.zeros((Wg, Wg), np.float32)
    for k in range(len(filt)):
        R[np.arange(k, Wg), np.arange(0, Wg - k)] = filt[k]
    return R


def _frangi_kernel(x_ref, a_ref, r_ref, o_ref, *, H, Hd, S, beta, c):
    """One packed strip per grid step.

    x_ref: (1, Hp, Wg)        zero-padded, lane-packed input strip
    a_ref: (S, 3*Hd, Hp)      column-pass Toeplitz filters  [g, g2, g1] / sigma
    r_ref: (3*S, Wg, Wg)      row-pass Toeplitz filters     [g2, g, g1] / sigma
    o_ref: (1, H, Wg)         softmax-weighted Frangi response of the strip
    """
    inv_2b2 = 1.0 / (2.0 * beta * beta)
    inv_2c2 = 1.0 / (2.0 * c * c)

    x = x_ref[0]                                     # (Hp, Wg), loaded once

    z = None       # streaming softmax denominator  sum_s exp(v_s)
    acc = None     # streaming weighted response    sum_s exp(v_s) * v_s

    for s in range(S):
        # ---- column (y) pass: one MXU matmul for the 3 filters of sigma s
        col = jnp.dot(a_ref[s], x, preferred_element_type=jnp.float32)  # (3Hd, Wg)
        cg = col[0 * Hd:1 * Hd, :]     # column-filtered with g
        cg2 = col[1 * Hd:2 * Hd, :]    # column-filtered with g2
        cg1 = col[2 * Hd:3 * Hd, :]    # column-filtered with g1

        # ---- row (x) pass: three MXU matmuls against banded Toeplitz matrices
        xx = jnp.dot(cg, r_ref[3 * s + 0], preferred_element_type=jnp.float32)
        yy = jnp.dot(cg2, r_ref[3 * s + 1], preferred_element_type=jnp.float32)
        xy = jnp.dot(cg1, r_ref[3 * s + 2], preferred_element_type=jnp.float32)

        # ---- _calc_frangi_response (vectorized size-2 "sort")
        tr = xx + yy
        d2 = (xx - yy) ** 2 + 4.0 * (xy * xy) + 1e-6
        disc = jnp.sqrt(d2)
        l_t1 = 0.5 * (tr + disc)
        l_t2 = 0.5 * (tr - disc)
        a1 = jnp.abs(l_t1)
        a2 = jnp.abs(l_t2)
        lam1 = jnp.minimum(a1, a2)                   # smaller |eigenvalue|
        lam2 = jnp.maximum(a1, a2)                   # larger  |eigenvalue|
        lam2_sign = jnp.where(a1 <= a2, l_t2, l_t1)  # signed, largest-|.| eig

        nz = lam2 != 0.0
        safe = jnp.where(nz, lam2, 1.0)
        ratio = lam1 * pl.reciprocal(safe, approx=True)      # EUP, off VALU
        blob = jnp.where(nz, jnp.exp(-(ratio * ratio) * inv_2b2), 0.0)
        # lambda1^2 + lambda2^2 == (tr^2 + disc^2)/2, eps included exactly as
        # in the reference (its lambdas carry the 1e-6 under the sqrt too).
        hn2 = 0.5 * (tr * tr + d2)
        struc = 1.0 - jnp.exp(-hn2 * inv_2c2)
        v = jnp.where(lam2_sign > 0.0, 0.0, blob * struc)

        # ---- streaming softmax over sigmas.  Safe without max-subtraction
        # because v is gated into [0, 1]  (blob, struc in [0,1], else 0).
        e = jnp.exp(v)
        z = e if z is None else z + e
        acc = e * v if acc is None else acc + e * v

    # Exact division for the final normalization (parity with the reference).
    o_ref[0] = acc[:H, :] / z[:H, :]


def soft_frangi_2d(img, *, kernel_size, sigmas, beta, c):
    """img: (B, C, H, W) float32  ->  (B, C, H, W) float32."""
    B, C, H, W = img.shape
    K = int(kernel_size)
    S = len(sigmas)
    p = K // 2
    N = B * C
    Hp = H + 2 * p
    Wp = W + 2 * p
    Hd = _round_up(H, 8)                  # sublane-aligned conv output rows

    # --- VMEM budgeting derived from the hardware generation --------------
    try:
        info = pltpu.get_tpu_info()
        vmem_cap = int(getattr(info, "vmem_capacity_bytes", 64 * 1024 * 1024))
    except Exception:                      # pragma: no cover - defensive
        vmem_cap = 64 * 1024 * 1024
    data_budget = int(vmem_cap * 0.35)                       # live-data cap
    vmem_limit = max(32 * 1024 * 1024,
                     min((vmem_cap * 3) // 4, 96 * 1024 * 1024))

    WG_MAX = 512      # bounds row-Toeplitz size / MXU flop waste per strip

    def est_bytes(G):
        Wg_ = _round_up(G * Wp, 128)
        lin = (2 * Hp + 2 * H + 18 * Hd) * Wg_              # I/O bufs + temps
        filt = 2 * (3 * S * Hd * Hp) + 2 * (3 * S * Wg_ * Wg_)
        return 4 * (lin + filt)

    # Largest packing that fits the budget; keep >= 2 grid steps when N >= 2
    # so v7x's two TensorCores both get work (no-op on v5e/v6e).
    G_cap = N if N < 2 else -(-N // 2)
    G = 1
    for cand in range(1, G_cap + 1):
        if _round_up(cand * Wp, 128) <= WG_MAX and est_bytes(cand) <= data_budget:
            G = cand
    NG = -(-N // G)
    Wg = _round_up(G * Wp, 128)           # lane-dense strip / store width

    # --- Toeplitz filter matrices (deterministic, built in numpy) ---------
    filts = _gaussian_derivative_filters(K, sigmas)
    A_all = np.zeros((S, 3 * Hd, Hp), np.float32)
    R_all = np.zeros((3 * S, Wg, Wg), np.float32)
    for s, (g, g1, g2) in enumerate(filts):
        A_all[s, 0 * Hd:1 * Hd] = _col_toeplitz(g, H, Hd, Hp)    # for xx
        A_all[s, 1 * Hd:2 * Hd] = _col_toeplitz(g2, H, Hd, Hp)   # for yy
        A_all[s, 2 * Hd:3 * Hd] = _col_toeplitz(g1, H, Hd, Hp)   # for xy
        R_all[3 * s + 0] = _row_toeplitz(g2, Wg)                 # xx row pass
        R_all[3 * s + 1] = _row_toeplitz(g, Wg)                  # yy row pass
        R_all[3 * s + 2] = _row_toeplitz(g1, Wg)                 # xy row pass
    A_all = jnp.asarray(A_all)
    R_all = jnp.asarray(R_all)

    # --- lane packing: G padded slices side by side, padded to 128-lanes ---
    x = img.astype(jnp.float32).reshape(N, H, W)
    n_pad = NG * G - N
    xp = jnp.pad(x, ((0, n_pad), (p, p), (p, p)))                # (NG*G, Hp, Wp)
    xg = (xp.reshape(NG, G, Hp, Wp)
            .transpose(0, 2, 1, 3)
            .reshape(NG, Hp, G * Wp))
    xg = jnp.pad(xg, ((0, 0), (0, 0), (0, Wg - G * Wp)))         # (NG, Hp, Wg)

    kernel = functools.partial(_frangi_kernel, H=H, Hd=Hd, S=S,
                               beta=float(beta), c=float(c))

    out_full = pl.pallas_call(
        kernel,
        out_shape=jax.ShapeDtypeStruct((NG, H, Wg), jnp.float32),
        grid_spec=pltpu.PrefetchScalarGridSpec(
            num_scalar_prefetch=0,
            grid=(NG,),
            in_specs=[
                pl.BlockSpec((1, Hp, Wg), lambda i: (i, 0, 0)),
                pl.BlockSpec((S, 3 * Hd, Hp), lambda i: (0, 0, 0)),
                pl.BlockSpec((3 * S, Wg, Wg), lambda i: (0, 0, 0)),
            ],
            out_specs=pl.BlockSpec((1, H, Wg), lambda i: (i, 0, 0)),
        ),
        compiler_params=pltpu.CompilerParams(
            dimension_semantics=("parallel",),
            vmem_limit_bytes=int(vmem_limit),
        ),
    )(xg, A_all, R_all)

    # --- unpack: keep the W valid columns of each packed slice (cheap XLA) --
    out = out_full[:, :, :G * Wp].reshape(NG, H, G, Wp)[:, :, :, :W]
    out = out.transpose(0, 2, 1, 3).reshape(NG * G, H, W)[:N]
    return out.reshape(B, C, H, W)


def _soft_frangi_reference(img, *, kernel_size, sigmas, beta, c):
    """Pure-JAX (XLA) reference mirroring the PyTorch module."""
    B, C, H, W = img.shape
    K = int(kernel_size)
    p = K // 2
    filts = _gaussian_derivative_filters(K, sigmas)
    xpad = jnp.pad(img.astype(jnp.float32), ((0, 0), (0, 0), (p, p), (p, p)))

    def sep_corr(fy, fx):
        acc = 0.0
        for ky in range(K):
            acc = acc + fy[ky] * xpad[:, :, ky:ky + H, :]
        out = 0.0
        for kx in range(K):
            out = out + fx[kx] * acc[:, :, :, kx:kx + W]
        return out

    resp = []
    for (g, g1, g2) in filts:
        xx = sep_corr(g, g2)
        yy = sep_corr(g2, g)
        xy = sep_corr(g1, g1)
        disc = jnp.sqrt((xx - yy) ** 2 + 4.0 * xy ** 2 + 1e-6)
        t1 = 0.5 * (xx + yy + disc)
        t2 = 0.5 * (xx + yy - disc)
        a1, a2 = jnp.abs(t1), jnp.abs(t2)
        lam1 = jnp.minimum(a1, a2)
        lam2 = jnp.maximum(a1, a2)
        lam2_sign = jnp.where(a1 <= a2, t2, t1)
        safe = jnp.where(lam2 != 0.0, lam2, 1.0)
        blob = jnp.where(lam2 != 0.0,
                         jnp.exp(-(lam1 / safe) ** 2 / (2.0 * beta * beta)), 0.0)
        struc = 1.0 - jnp.exp(-(lam1 ** 2 + lam2 ** 2) / (2.0 * c * c))
        resp.append(jnp.where(lam2_sign > 0.0, 0.0, blob * struc))
    resp = jnp.stack(resp, axis=0)
    wts = jax.nn.softmax(resp, axis=0)
    return jnp.sum(wts * resp, axis=0)


if __name__ == "__main__":
    key = jax.random.PRNGKey(0)
    img = jax.random.normal(key, (2, 4, 16, 16), dtype=jnp.float32)
    params = dict(kernel_size=5, sigmas=[1.0, 2.0], beta=0.5, c=0.5)

    out = soft_frangi_2d(img, **params)
    out = jax.block_until_ready(out)

    assert out.shape == (2, 4, 16, 16)
    assert out.dtype == jnp.float32
    assert bool(jnp.all(jnp.isfinite(out)))

    # Parity with a pure-JAX reference (loose tol: MXU f32 matmul passes and
    # the approx EUP reciprocal on the internal lambda1/lambda2 ratio).
    ref = _soft_frangi_reference(img, **params)
    max_err = float(jnp.max(jnp.abs(out - ref)))
    assert max_err < 5e-2, f"mismatch vs pure-JAX reference: {max_err}"

    print("KERNEL_OK")
</pallas_src>

<mosaic_0001>
module attributes {stable_mosaic.version = 11 : i64} {
  func.func @_frangi_kernel(%arg0: i32, %arg1: memref<1x20x128xf32, #tpu.memory_space<vmem>>, %arg2: memref<2x48x20xf32, #tpu.memory_space<vmem>>, %arg3: memref<6x128x128xf32, #tpu.memory_space<vmem>>, %arg4: memref<1x16x128xf32, #tpu.memory_space<vmem>>) attributes {dimension_semantics = [#tpu.dimension_semantics<parallel>], iteration_bounds = array<i64: 2>, scalar_prefetch = 0 : i64, scratch_operands = 0 : i64, tpu.core_type = #tpu.core_type<tc>, window_params = [{transform_indices = @transform_0, window_bounds = array<i64: 1, 20, 128>}, {pipeline_mode = #tpu.pipeline_mode<synchronous>, transform_indices = @transform_1, window_bounds = array<i64: 2, 48, 20>}, {pipeline_mode = #tpu.pipeline_mode<synchronous>, transform_indices = @transform_2, window_bounds = array<i64: 6, 128, 128>}, {transform_indices = @transform_3, window_bounds = array<i64: 1, 16, 128>}]} {
    %c0 = arith.constant 0 : index
    %c0_0 = arith.constant 0 : index
    %c0_1 = arith.constant 0 : index
    %0 = vector.load %arg1[%c0, %c0_0, %c0_1] : memref<1x20x128xf32, #tpu.memory_space<vmem>>, vector<1x20x128xf32>
    %1 = vector.shape_cast %0 : vector<1x20x128xf32> to vector<20x128xf32>
    %c0_2 = arith.constant 0 : index
    %c0_3 = arith.constant 0 : index
    %c0_4 = arith.constant 0 : index
    %2 = vector.load %arg2[%c0_2, %c0_3, %c0_4] : memref<2x48x20xf32, #tpu.memory_space<vmem>>, vector<1x48x20xf32>
    %3 = vector.shape_cast %2 : vector<1x48x20xf32> to vector<48x20xf32>
    %cst = arith.constant dense<0.000000e+00> : vector<48x128xf32>
    %4 = tpu.matmul %3, %1, %cst {dimension_numbers = #tpu.dot_dimension_numbers<[1], [0], [0], [1], [0, 0, 1, 1], [], []>} : vector<48x20xf32>, vector<20x128xf32>, vector<48x128xf32> -> vector<48x128xf32>
    %5 = vector.extract_strided_slice %4 {offsets = [0, 0], sizes = [16, 128], strides = [1, 1]} : vector<48x128xf32> to vector<16x128xf32>
    %6 = vector.extract_strided_slice %4 {offsets = [16, 0], sizes = [16, 128], strides = [1, 1]} : vector<48x128xf32> to vector<16x128xf32>
    %7 = vector.extract_strided_slice %4 {offsets = [32, 0], sizes = [16, 128], strides = [1, 1]} : vector<48x128xf32> to vector<16x128xf32>
    %c0_5 = arith.constant 0 : index
    %c0_6 = arith.constant 0 : index
    %c0_7 = arith.constant 0 : index
    %8 = vector.load %arg3[%c0_5, %c0_6, %c0_7] : memref<6x128x128xf32, #tpu.memory_space<vmem>>, vector<1x128x128xf32>
    %9 = vector.shape_cast %8 : vector<1x128x128xf32> to vector<128x128xf32>
    %cst_8 = arith.constant dense<0.000000e+00> : vector<16x128xf32>
    %10 = tpu.matmul %5, %9, %cst_8 {dimension_numbers = #tpu.dot_dimension_numbers<[1], [0], [0], [1], [0, 0, 1, 1], [], []>} : vector<16x128xf32>, vector<128x128xf32>, vector<16x128xf32> -> vector<16x128xf32>
    %c1 = arith.constant 1 : index
    %c0_9 = arith.constant 0 : index
    %c0_10 = arith.constant 0 : index
    %11 = vector.load %arg3[%c1, %c0_9, %c0_10] : memref<6x128x128xf32, #tpu.memory_space<vmem>>, vector<1x128x128xf32>
    %12 = vector.shape_cast %11 : vector<1x128x128xf32> to vector<128x128xf32>
    %cst_11 = arith.constant dense<0.000000e+00> : vector<16x128xf32>
    %13 = tpu.matmul %6, %12, %cst_11 {dimension_numbers = #tpu.dot_dimension_numbers<[1], [0], [0], [1], [0, 0, 1, 1], [], []>} : vector<16x128xf32>, vector<128x128xf32>, vector<16x128xf32> -> vector<16x128xf32>
    %c2 = arith.constant 2 : index
    %c0_12 = arith.constant 0 : index
    %c0_13 = arith.constant 0 : index
    %14 = vector.load %arg3[%c2, %c0_12, %c0_13] : memref<6x128x128xf32, #tpu.memory_space<vmem>>, vector<1x128x128xf32>
    %15 = vector.shape_cast %14 : vector<1x128x128xf32> to vector<128x128xf32>
    %cst_14 = arith.constant dense<0.000000e+00> : vector<16x128xf32>
    %16 = tpu.matmul %7, %15, %cst_14 {dimension_numbers = #tpu.dot_dimension_numbers<[1], [0], [0], [1], [0, 0, 1, 1], [], []>} : vector<16x128xf32>, vector<128x128xf32>, vector<16x128xf32> -> vector<16x128xf32>
    %17 = arith.addf %10, %13 : vector<16x128xf32>
    %18 = arith.subf %10, %13 : vector<16x128xf32>
    %19 = arith.mulf %18, %18 : vector<16x128xf32>
    %20 = arith.mulf %16, %16 : vector<16x128xf32>
    %cst_15 = arith.constant 4.000000e+00 : f32
    %21 = vector.broadcast %cst_15 : f32 to vector<16x128xf32>
    %22 = arith.mulf %21, %20 : vector<16x128xf32>
    %23 = arith.addf %19, %22 : vector<16x128xf32>
    %cst_16 = arith.constant 9.99999997E-7 : f32
    %24 = vector.broadcast %cst_16 : f32 to vector<16x128xf32>
    %25 = arith.addf %23, %24 : vector<16x128xf32>
    %26 = math.sqrt %25 : vector<16x128xf32>
    %27 = arith.addf %17, %26 : vector<16x128xf32>
    %cst_17 = arith.constant 5.000000e-01 : f32
    %28 = vector.broadcast %cst_17 : f32 to vector<16x128xf32>
    %29 = arith.mulf %28, %27 : vector<16x128xf32>
    %30 = arith.subf %17, %26 : vector<16x128xf32>
    %cst_18 = arith.constant 5.000000e-01 : f32
    %31 = vector.broadcast %cst_18 : f32 to vector<16x128xf32>
    %32 = arith.mulf %31, %30 : vector<16x128xf32>
    %33 = math.absf %29 : vector<16x128xf32>
    %34 = math.absf %32 : vector<16x128xf32>
    %35 = arith.minimumf %33, %34 : vector<16x128xf32>
    %36 = arith.maximumf %33, %34 : vector<16x128xf32>
    %37 = arith.cmpf ole, %33, %34 : vector<16x128xf32>
    %38 = arith.select %37, %32, %29 : vector<16x128xi1>, vector<16x128xf32>
    %cst_19 = arith.constant 0.000000e+00 : f32
    %39 = vector.broadcast %cst_19 : f32 to vector<16x128xf32>
    %40 = arith.cmpf one, %36, %39 : vector<16x128xf32>
    %cst_20 = arith.constant 1.000000e+00 : f32
    %41 = vector.broadcast %cst_20 : f32 to vector<16x128xf32>
    %42 = arith.select %40, %36, %41 : vector<16x128xi1>, vector<16x128xf32>
    %43 = tpu.reciprocal %42 {approx = true} : vector<16x128xf32> -> vector<16x128xf32>
    %44 = arith.mulf %35, %43 : vector<16x128xf32>
    %45 = arith.mulf %44, %44 : vector<16x128xf32>
    %cst_21 = arith.constant 0.000000e+00 : f32
    %46 = vector.broadcast %cst_21 : f32 to vector<16x128xf32>
    %47 = arith.subf %46, %45 : vector<16x128xf32>
    %cst_22 = arith.constant 2.000000e+00 : f32
    %48 = vector.broadcast %cst_22 : f32 to vector<16x128xf32>
    %49 = arith.mulf %47, %48 : vector<16x128xf32>
    %50 = math.exp %49 : vector<16x128xf32>
    %cst_23 = arith.constant 0.000000e+00 : f32
    %51 = vector.broadcast %cst_23 : f32 to vector<16x128xf32>
    %52 = arith.select %40, %50, %51 : vector<16x128xi1>, vector<16x128xf32>
    %53 = arith.mulf %17, %17 : vector<16x128xf32>
    %54 = arith.addf %53, %25 : vector<16x128xf32>
    %cst_24 = arith.constant 5.000000e-01 : f32
    %55 = vector.broadcast %cst_24 : f32 to vector<16x128xf32>
    %56 = arith.mulf %55, %54 : vector<16x128xf32>
    %cst_25 = arith.constant 0.000000e+00 : f32
    %57 = vector.broadcast %cst_25 : f32 to vector<16x128xf32>
    %58 = arith.subf %57, %56 : vector<16x128xf32>
    %cst_26 = arith.constant 2.000000e+00 : f32
    %59 = vector.broadcast %cst_26 : f32 to vector<16x128xf32>
    %60 = arith.mulf %58, %59 : vector<16x128xf32>
    %61 = math.exp %60 : vector<16x128xf32>
    %cst_27 = arith.constant 1.000000e+00 : f32
    %62 = vector.broadcast %cst_27 : f32 to vector<16x128xf32>
    %63 = arith.subf %62, %61 : vector<16x128xf32>
    %cst_28 = arith.constant 0.000000e+00 : f32
    %64 = vector.broadcast %cst_28 : f32 to vector<16x128xf32>
    %65 = arith.cmpf ogt, %38, %64 : vector<16x128xf32>
    %66 = arith.mulf %52, %63 : vector<16x128xf32>
    %cst_29 = arith.constant 0.000000e+00 : f32
    %67 = vector.broadcast %cst_29 : f32 to vector<16x128xf32>
    %68 = arith.select %65, %67, %66 : vector<16x128xi1>, vector<16x128xf32>
    %69 = math.exp %68 : vector<16x128xf32>
    %70 = arith.mulf %69, %68 : vector<16x128xf32>
    %c1_30 = arith.constant 1 : index
    %c0_31 = arith.constant 0 : index
    %c0_32 = arith.constant 0 : index
    %71 = vector.load %arg2[%c1_30, %c0_31, %c0_32] : memref<2x48x20xf32, #tpu.memory_space<vmem>>, vector<1x48x20xf32>
    %72 = vector.shape_cast %71 : vector<1x48x20xf32> to vector<48x20xf32>
    %cst_33 = arith.constant dense<0.000000e+00> : vector<48x128xf32>
    %73 = tpu.matmul %72, %1, %cst_33 {dimension_numbers = #tpu.dot_dimension_numbers<[1], [0], [0], [1], [0, 0, 1, 1], [], []>} : vector<48x20xf32>, vector<20x128xf32>, vector<48x128xf32> -> vector<48x128xf32>
    %74 = vector.extract_strided_slice %73 {offsets = [0, 0], sizes = [16, 128], strides = [1, 1]} : vector<48x128xf32> to vector<16x128xf32>
    %75 = vector.extract_strided_slice %73 {offsets = [16, 0], sizes = [16, 128], strides = [1, 1]} : vector<48x128xf32> to vector<16x128xf32>
    %76 = vector.extract_strided_slice %73 {offsets = [32, 0], sizes = [16, 128], strides = [1, 1]} : vector<48x128xf32> to vector<16x128xf32>
    %c3 = arith.constant 3 : index
    %c0_34 = arith.constant 0 : index
    %c0_35 = arith.constant 0 : index
    %77 = vector.load %arg3[%c3, %c0_34, %c0_35] : memref<6x128x128xf32, #tpu.memory_space<vmem>>, vector<1x128x128xf32>
    %78 = vector.shape_cast %77 : vector<1x128x128xf32> to vector<128x128xf32>
    %cst_36 = arith.constant dense<0.000000e+00> : vector<16x128xf32>
    %79 = tpu.matmul %74, %78, %cst_36 {dimension_numbers = #tpu.dot_dimension_numbers<[1], [0], [0], [1], [0, 0, 1, 1], [], []>} : vector<16x128xf32>, vector<128x128xf32>, vector<16x128xf32> -> vector<16x128xf32>
    %c4 = arith.constant 4 : index
    %c0_37 = arith.constant 0 : index
    %c0_38 = arith.constant 0 : index
    %80 = vector.load %arg3[%c4, %c0_37, %c0_38] : memref<6x128x128xf32, #tpu.memory_space<vmem>>, vector<1x128x128xf32>
    %81 = vector.shape_cast %80 : vector<1x128x128xf32> to vector<128x128xf32>
    %cst_39 = arith.constant dense<0.000000e+00> : vector<16x128xf32>
    %82 = tpu.matmul %75, %81, %cst_39 {dimension_numbers = #tpu.dot_dimension_numbers<[1], [0], [0], [1], [0, 0, 1, 1], [], []>} : vector<16x128xf32>, vector<128x128xf32>, vector<16x128xf32> -> vector<16x128xf32>
    %c5 = arith.constant 5 : index
    %c0_40 = arith.constant 0 : index
    %c0_41 = arith.constant 0 : index
    %83 = vector.load %arg3[%c5, %c0_40, %c0_41] : memref<6x128x128xf32, #tpu.memory_space<vmem>>, vector<1x128x128xf32>
    %84 = vector.shape_cast %83 : vector<1x128x128xf32> to vector<128x128xf32>
    %cst_42 = arith.constant dense<0.000000e+00> : vector<16x128xf32>
    %85 = tpu.matmul %76, %84, %cst_42 {dimension_numbers = #tpu.dot_dimension_numbers<[1], [0], [0], [1], [0, 0, 1, 1], [], []>} : vector<16x128xf32>, vector<128x128xf32>, vector<16x128xf32> -> vector<16x128xf32>
    %86 = arith.addf %79, %82 : vector<16x128xf32>
    %87 = arith.subf %79, %82 : vector<16x128xf32>
    %88 = arith.mulf %87, %87 : vector<16x128xf32>
    %89 = arith.mulf %85, %85 : vector<16x128xf32>
    %cst_43 = arith.constant 4.000000e+00 : f32
    %90 = vector.broadcast %cst_43 : f32 to vector<16x128xf32>
    %91 = arith.mulf %90, %89 : vector<16x128xf32>
    %92 = arith.addf %88, %91 : vector<16x128xf32>
    %cst_44 = arith.constant 9.99999997E-7 : f32
    %93 = vector.broadcast %cst_44 : f32 to vector<16x128xf32>
    %94 = arith.addf %92, %93 : vector<16x128xf32>
    %95 = math.sqrt %94 : vector<16x128xf32>
    %96 = arith.addf %86, %95 : vector<16x128xf32>
    %cst_45 = arith.constant 5.000000e-01 : f32
    %97 = vector.broadcast %cst_45 : f32 to vector<16x128xf32>
    %98 = arith.mulf %97, %96 : vector<16x128xf32>
    %99 = arith.subf %86, %95 : vector<16x128xf32>
    %cst_46 = arith.constant 5.000000e-01 : f32
    %100 = vector.broadcast %cst_46 : f32 to vector<16x128xf32>
    %101 = arith.mulf %100, %99 : vector<16x128xf32>
    %102 = math.absf %98 : vector<16x128xf32>
    %103 = math.absf %101 : vector<16x128xf32>
    %104 = arith.minimumf %102, %103 : vector<16x128xf32>
    %105 = arith.maximumf %102, %103 : vector<16x128xf32>
    %106 = arith.cmpf ole, %102, %103 : vector<16x128xf32>
    %107 = arith.select %106, %101, %98 : vector<16x128xi1>, vector<16x128xf32>
    %cst_47 = arith.constant 0.000000e+00 : f32
    %108 = vector.broadcast %cst_47 : f32 to vector<16x128xf32>
    %109 = arith.cmpf one, %105, %108 : vector<16x128xf32>
    %cst_48 = arith.constant 1.000000e+00 : f32
    %110 = vector.broadcast %cst_48 : f32 to vector<16x128xf32>
    %111 = arith.select %109, %105, %110 : vector<16x128xi1>, vector<16x128xf32>
    %112 = tpu.reciprocal %111 {approx = true} : vector<16x128xf32> -> vector<16x128xf32>
    %113 = arith.mulf %104, %112 : vector<16x128xf32>
    %114 = arith.mulf %113, %113 : vector<16x128xf32>
    %cst_49 = arith.constant 0.000000e+00 : f32
    %115 = vector.broadcast %cst_49 : f32 to vector<16x128xf32>
    %116 = arith.subf %115, %114 : vector<16x128xf32>
    %cst_50 = arith.constant 2.000000e+00 : f32
    %117 = vector.broadcast %cst_50 : f32 to vector<16x128xf32>
    %118 = arith.mulf %116, %117 : vector<16x128xf32>
    %119 = math.exp %118 : vector<16x128xf32>
    %cst_51 = arith.constant 0.000000e+00 : f32
    %120 = vector.broadcast %cst_51 : f32 to vector<16x128xf32>
    %121 = arith.select %109, %119, %120 : vector<16x128xi1>, vector<16x128xf32>
    %122 = arith.mulf %86, %86 : vector<16x128xf32>
    %123 = arith.addf %122, %94 : vector<16x128xf32>
    %cst_52 = arith.constant 5.000000e-01 : f32
    %124 = vector.broadcast %cst_52 : f32 to vector<16x128xf32>
    %125 = arith.mulf %124, %123 : vector<16x128xf32>
    %cst_53 = arith.constant 0.000000e+00 : f32
    %126 = vector.broadcast %cst_53 : f32 to vector<16x128xf32>
    %127 = arith.subf %126, %125 : vector<16x128xf32>
    %cst_54 = arith.constant 2.000000e+00 : f32
    %128 = vector.broadcast %cst_54 : f32 to vector<16x128xf32>
    %129 = arith.mulf %127, %128 : vector<16x128xf32>
    %130 = math.exp %129 : vector<16x128xf32>
    %cst_55 = arith.constant 1.000000e+00 : f32
    %131 = vector.broadcast %cst_55 : f32 to vector<16x128xf32>
    %132 = arith.subf %131, %130 : vector<16x128xf32>
    %cst_56 = arith.constant 0.000000e+00 : f32
    %133 = vector.broadcast %cst_56 : f32 to vector<16x128xf32>
    %134 = arith.cmpf ogt, %107, %133 : vector<16x128xf32>
    %135 = arith.mulf %121, %132 : vector<16x128xf32>
    %cst_57 = arith.constant 0.000000e+00 : f32
    %136 = vector.broadcast %cst_57 : f32 to vector<16x128xf32>
    %137 = arith.select %134, %136, %135 : vector<16x128xi1>, vector<16x128xf32>
    %138 = math.exp %137 : vector<16x128xf32>
    %139 = arith.addf %69, %138 : vector<16x128xf32>
    %140 = arith.mulf %138, %137 : vector<16x128xf32>
    %141 = arith.addf %70, %140 : vector<16x128xf32>
    %142 = arith.divf %141, %139 : vector<16x128xf32>
    %c0_58 = arith.constant 0 : index
    %c0_59 = arith.constant 0 : index
    %c0_60 = arith.constant 0 : index
    %143 = vector.load %arg4[%c0_58, %c0_59, %c0_60] : memref<1x16x128xf32, #tpu.memory_space<vmem>>, vector<1x16x128xf32>
    %144 = vector.shape_cast %143 : vector<1x16x128xf32> to vector<16x128xf32>
    %145 = vector.shape_cast %142 : vector<16x128xf32> to vector<1x16x128xf32>
    tpu.vector_store %arg4[%c0_58, %c0_59, %c0_60], %145 {strides = array<i32>} : memref<1x16x128xf32, #tpu.memory_space<vmem>>, vector<1x16x128xf32>,
    return
  }
  func.func @transform_0(%arg0: i32) -> (i32, i32, i32) {
    %c0_i32 = arith.constant 0 : i32
    %c0_i32_0 = arith.constant 0 : i32
    %c0_i32_1 = arith.constant 0 : i32
    return %arg0, %c0_i32, %c0_i32_0 : i32, i32, i32
  }
  func.func @transform_1(%arg0: i32) -> (i32, i32, i32) {
    %c0_i32 = arith.constant 0 : i32
    %c0_i32_0 = arith.constant 0 : i32
    %c0_i32_1 = arith.constant 0 : i32
    %c0_i32_2 = arith.constant 0 : i32
    return %c0_i32, %c0_i32_0, %c0_i32_1 : i32, i32, i32
  }
  func.func @transform_2(%arg0: i32) -> (i32, i32, i32) {
    %c0_i32 = arith.constant 0 : i32
    %c0_i32_0 = arith.constant 0 : i32
    %c0_i32_1 = arith.constant 0 : i32
    %c0_i32_2 = arith.constant 0 : i32
    return %c0_i32, %c0_i32_0, %c0_i32_1 : i32, i32, i32
  }
  func.func @transform_3(%arg0: i32) -> (i32, i32, i32) {
    %c0_i32 = arith.constant 0 : i32
    %c0_i32_0 = arith.constant 0 : i32
    %c0_i32_1 = arith.constant 0 : i32
    return %arg0, %c0_i32, %c0_i32_0 : i32, i32, i32
  }
}

</mosaic_0001>

<bundles_post_ra>
// kernel: tpu_custom_call.1
= control target key start
LH: loop header
LB: loop body
LE: loop exit
PB: predicated region body
PF: predicated region fallthrough
CT: control target
= control target key end

     0   :  { %8 = vsyncpa [#allocation3], 0  ;;  %s1461_s0 = inlined_call_operand.vmem [shape: f32[2,20,128], index: 0, kind: input, shape index: {}]   ;;  %s1462_s1 = inlined_call_operand.vmem [shape: f32[2,48,20], index: 1, kind: input, shape index: {}]   ;;  %s1463_s2 = inlined_call_operand.hbm [shape: f32[6,128,128], index: 2, kind: input, shape index: {}]   ;;  %s1464_s3 = inlined_call_operand.hbm [shape: f32[2,16,128], index: 3, kind: output, shape index: {}]  }
   0x1   :  { %9 = vsyncpa [#allocation4], 0 }
   0x2   :  { %11 = vsyncpa [#allocation4 + $0x1], 0  ;;  %s1146_s12 = smov 0   ;;  %s1148_s13 = smov 0  }
   0x3   :  { %s1150_s14 = smov 0   ;;  %s1152_s15 = smov 0  }
   0x4 LB: > { %s1167_s16 = sadd.s32 4294967295, %s1119_s15   ;;  %s890_s17 = sadd.s32 4294967294, %s1119_s15   ;;  %s1119_s15 = sphi %s1152_s15, %s1470_s15   ;;  %s1115_s14 = sphi %s1150_s14, %s1469_s14   ;;  %s1111_s13 = sphi %s1148_s13, %s1468_s13   ;;  %s1107_s12 = sphi %s1146_s12, %s1467_s12  }
   0x5   : > { %s1171_s18 = sadd.s32 1, %s1119_s15   ;;  %s92_s19 = sadd.s32 1, %s1115_s14 }
   0x6   : > { %s89_s20 = ssub.s32 %s1119_s15, %s1171_s18  ;;  %p102_p0 = scmp.ne.s32.totalorder %s1115_s14, %s1111_s13 }
   0x7   : > { %p90_p1 = scmp.eq.s32.totalorder %s89_s20, 0  ;;  %p103_p2 = scmp.eq.s32.totalorder %s1167_s16, 1 }
   0x8   : > { %p108_p3 = scmp.ne.s32.totalorder %s1111_s13, %s1107_s12  ;;  %p109_p4 = scmp.eq.s32.totalorder %s890_s17, 1 }
   0x9   : > { %s1182_s21 = scalar_select %p90_p1, %s1115_s14, %s92_s19  }
   0xa   : > { %p1184_p5 = por %p103_p2, %p102_p0  ;;  %p1188_p6 = por %p109_p4, %p108_p3 }
   0xb   : > { %p891_p7 = scmp.ge.s32.totalorder %s1119_s15, 1  ;;  %p116_p8 = scmp.lt.s32.totalorder %s1119_s15, 3 }
   0xc   : > { %p939_p9 = scmp.eq.s32.totalorder %s1167_s16, 0  ;;  %s130_s26 = sshll.u32 %s1463_s2, 4  ;;  %s131_s26 = int_to_ptr.hbm [resolvable:$true] %s130_s26 }
   0xd   : > { %p117_p10 = pnand %p891_p7, %p116_p8  ;;  %s1121_s27 = smov [#allocation2]  }
   0xe   : > { %s132_s28 = sshll.u32 %s1121_s27, 4  ;;  %s1122_s29 = smov 128   ;;  %s133_s28 = int_to_ptr.vmem [resolvable:$true] %s132_s28 }
   0xf   : > { %p931_p11 = pneg %p117_p10  ;;  %s1123_s30 = smov 8  }
  0x10   : > { %156 = sbr.rel (%p117_p10) target bundleno = 576 (0x240), region = 32 }
  0x11   : > { %p932_p12 = pnand %p939_p9, %p931_p11 }
  0x13   : > { %934 = dma.hbm_to_vmem [thread:$0]  (!%p932_p12), %s131_s26, 12288, %s133_s28, [#allocation3], %s1122_s29, %s1122_s29, %s1123_s30  }
  0x15   : > { %1098 = dma.done.wait (%p939_p9), [#allocation3], 12288  }
  0x16   : > { %1100 = vsyncadd (%p939_p9), [#allocation3], 4294955008  ;;  %p181_p13 = scmp.lt.s32.totalorder %s1167_s16, 1  ;;  %vm214_vm0 = vcmask 1043456   ;;  %v189_v3 = vld [vmem:[%s1462_s1] sm:$0xff]  ;;  %vm195_vm1 = vcmask 162816  }
  0x17   : > { %v190_v4 = vld [vmem:[%s1462_s1 + $0x8] sm:$0xff]  ;;  %v268_v5 = vld [vmem:[#allocation2 + $0x78] sm:$0xff]  ;;  %v267_v6 = vld [vmem:[#allocation2 + $0x70] sm:$0xff]  ;;  %s178_s24 = sand.u32 1, %s1111_s13   ;;  %s923_s26 = sshll.u32 %s1167_s16, 4 }
  0x18   : > { %s182_s4 = scalar_select %p181_p13, %s1167_s16, 1  ;;  %269 = vmatpush.msra.mxu1 %v268_v5  ;;  %v266_v7 = vld [vmem:[#allocation2 + $0x68] sm:$0xff]  ;;  %v308_v8 = vld [vmem:[#allocation2 + $0xf8] sm:$0xff]  ;;  %v307_v9 = vld [vmem:[#allocation2 + $0xf0] sm:$0xff] }
  0x19   : > { %v265_v10 = vld [vmem:[#allocation2 + $0x60] sm:$0xff]  ;;  %309 = vmatpush.msra.mxu2 %v308_v8  ;;  %v191_v11 = vld [vmem:[%s1462_s1 + $0x10] sm:$0xff]  ;;  %v306_v12 = vld [vmem:[#allocation2 + $0xe8] sm:$0xff]  ;;  %s896_s25 = sshll.u32 %s178_s24, 4  ;;  %s812_s29 = scalar_lea.hbm %s1464_s3, %s923_s26 }
  0x1a   : > { %s924_s5 = smul.u32 24, %s182_s4  ;;  %270 = vmatpush.msra.mxu1 %v267_v6  ;;  %v264_v13 = vld [vmem:[#allocation2 + $0x58] sm:$0xff]  ;;  %v305_v14 = vld [vmem:[#allocation2 + $0xe0] sm:$0xff]  ;;  %v263_v15 = vld [vmem:[#allocation2 + $0x50] sm:$0xff]  ;;  %s180_s30 = scalar_lea.vmem [#allocation5], %s896_s25 }
  0x1b   : > { %310 = vmatpush.msra.mxu2 %v307_v9  ;;  %v304_v16 = vld [vmem:[#allocation2 + $0xd8] sm:$0xff]  ;;  %v262_v17 = vld [vmem:[#allocation2 + $0x48] sm:$0xff]  ;;  %v303_v18 = vld [vmem:[#allocation2 + $0xd0] sm:$0xff]  ;;  %s813_s4 = sshll.u32 %s180_s30, 4  ;;  %s815_s16 = sshll.u32 %s812_s29, 4  ;;  %s814_s4 = int_to_ptr.vmem [resolvable:$true] %s813_s4  ;;  %s816_s16 = int_to_ptr.hbm [resolvable:$true] %s815_s16 }
  0x1c   : > { %s185_s8 = scalar_lea.vmem %s1461_s0, %s924_s5  ;;  %271 = vmatpush.msra.mxu1 %v266_v7  ;;  %v261_v19 = vld [vmem:[#allocation2 + $0x40] sm:$0xff]  ;;  %v192_v20 = vld [vmem:[%s1462_s1 + $0x18] sm:$0xff]  ;;  %v302_v21 = vld [vmem:[#allocation2 + $0xc8] sm:$0xff]  ;;  %s801_s5 = scalar_lea.sflag [#allocation4], %s178_s24 }
  0x1d   : > { %v1209_v0 = vld [vmem:[%s185_s8 + $0x10] sm:$0xf]  ;;  %v1211_v1 = vld [vmem:[%s185_s8 + $0x8] sm:$0xff]  ;;  %v1215_v2 = vld [vmem:[%s185_s8] sm:$0xff]  ;;  %311 = vmatpush.msra.mxu2 %v306_v12  ;;  %s1067_s6 = sshra.s32 %s816_s16, 4  ;;  %s1073_s10 = scalar_lea.hbm %s1464_s3, 32  ;;  %s1068_s6 = int_to_ptr.hbm [resolvable:$true] %s1067_s6 }
  0x1e   : > { %898 = vmatpush.msk.msra.mxu0 %vm214_vm0, %v1209_v0  ;;  %272 = vmatpush.msra.mxu1 %v265_v10  ;;  %v260_v22 = vld [vmem:[#allocation2 + $0x38] sm:$0xff]  ;;  %v259_v23 = vld [vmem:[#allocation2 + $0x30] sm:$0xff]  ;;  %v258_v24 = vld [vmem:[#allocation2 + $0x28] sm:$0xff]  ;;  %s1069_s7 = scalar_lea.hbm %s1068_s6, 16  ;;  %p1074_p3 = scmp.lt.s32.totalorder %s1068_s6, %s1464_s3 }
  0x1f   : > { %312 = vmatpush.msra.mxu2 %v305_v14  ;;  %v257_v25 = vld [vmem:[#allocation2 + $0x20] sm:$0xff]  ;;  %v256_v27 = vld [vmem:[#allocation2 + $0x18] sm:$0xff]  ;;  %v255_v28 = vld [vmem:[#allocation2 + $0x10] sm:$0xff]  ;;  %p1070_p0 = scmp.ne.s32.totalorder %s1068_s6, %s1069_s7  ;;  %p1075_p4 = scmp.lt.s32.totalorder %s1073_s10, %s1069_s7 }
  0x20   : > { %232 = vmatpush.msra.mxu0 %v1211_v1  ;;  %273 = vmatpush.msra.mxu1 %v264_v13  ;;  %v193_v26 = vld [vmem:[%s1462_s1 + $0x20] sm:$0xff]  ;;  %v254_v29 = vld [vmem:[#allocation2 + $0x8] sm:$0xff]  ;;  %v300_v33 = vld [vmem:[#allocation2 + $0xb8] sm:$0xff] }
  0x21   : > { %313 = vmatpush.msra.mxu2 %v304_v16  ;;  %v194_v30 = vld [vmem:[%s1462_s1 + $0x28] sm:$0xff]  ;;  %v253_v31 = vld [vmem:[#allocation2] sm:$0xff]  ;;  %v348_v34 = vld [vmem:[#allocation2 + $0x178] sm:$0xff]  ;;  %p1071_p1 = pnand %p1070_p0, %p1184_p5  ;;  %p1076_p7 = por %p1075_p4, %p1074_p3 }
  0x22   : > { %233 = vmatpush.msra.mxu0 %v1215_v2  ;;  %274 = vmatpush.msra.mxu1 %v263_v15  ;;  %v301_v32 = vld [vmem:[#allocation2 + $0xc0] sm:$0xff]  ;;  %v299_v35 = vld [vmem:[#allocation2 + $0xb0] sm:$0xff]  ;;  %v298_v37 = vld [vmem:[#allocation2 + $0xa8] sm:$0xff] }
  0x23   : > { %899 = vmatmul.msk.f32.vlgmr.msra.gmra.mxu0 %vm195_vm1, %v189_v3  ;;  %314 = vmatpush.msra.mxu2 %v303_v18  ;;  %v347_v36 = vld [vmem:[#allocation2 + $0x170] sm:$0xff]  ;;  %v346_v38 = vld [vmem:[#allocation2 + $0x168] sm:$0xff]  ;;  %v297_v39 = vld [vmem:[#allocation2 + $0xa0] sm:$0xff]  ;;  %p1072_p2 = pneg %p1071_p1 }
  0x24   : > { %275 = vmatpush.msra.mxu1 %v262_v17  ;;  %349 = vmatpush.msra.mxu3 %v348_v34  ;;  %v345_v40 = vld [vmem:[#allocation2 + $0x160] sm:$0xff]  ;;  %v296_v41 = vld [vmem:[#allocation2 + $0x98] sm:$0xff]  ;;  %v295_v43 = vld [vmem:[#allocation2 + $0x90] sm:$0xff] }
  0x25   : > { %315 = vmatpush.msra.mxu2 %v302_v21  ;;  %v344_v42 = vld [vmem:[#allocation2 + $0x158] sm:$0xff]  ;;  %v343_v44 = vld [vmem:[#allocation2 + $0x150] sm:$0xff]  ;;  %v294_v45 = vld [vmem:[#allocation2 + $0x88] sm:$0xff]  ;;  %p1077_p8 = pnand %p1076_p7, %p1072_p2 }
  0x26   : > { %276 = vmatpush.msra.mxu1 %v261_v19  ;;  %350 = vmatpush.msra.mxu3 %v347_v36  ;;  %v342_v46 = vld [vmem:[#allocation2 + $0x148] sm:$0xff]  ;;  %v293_v47 = vld [vmem:[#allocation2 + $0x80] sm:$0xff]  ;;  %v340_v49 = vld [vmem:[#allocation2 + $0x138] sm:$0xff] }
  0x27   : > { %316 = vmatpush.msra.mxu2 %v301_v32  ;;  %v341_v48 = vld [vmem:[#allocation2 + $0x140] sm:$0xff]  ;;  %v339_v50 = vld [vmem:[#allocation2 + $0x130] sm:$0xff]  ;;  %v338_v51 = vld [vmem:[#allocation2 + $0x128] sm:$0xff] }
  0x28   : > { %277 = vmatpush.msra.mxu1 %v260_v22  ;;  %351 = vmatpush.msra.mxu3 %v346_v38  ;;  %v337_v52 = vld [vmem:[#allocation2 + $0x120] sm:$0xff]  ;;  %v336_v53 = vld [vmem:[#allocation2 + $0x118] sm:$0xff]  ;;  %v335_v54 = vld [vmem:[#allocation2 + $0x110] sm:$0xff] }
  0x29   : > { %317 = vmatpush.msra.mxu2 %v300_v33  ;;  %v334_v55 = vld [vmem:[#allocation2 + $0x108] sm:$0xff]  ;;  %v333_v56 = vld [vmem:[#allocation2 + $0x100] sm:$0xff]  ;;  %v905_v59 = vld [vmem:[%s1462_s1 + $0x30] sm:$0xff] }
  0x2a   : > { %278 = vmatpush.msra.mxu1 %v259_v23  ;;  %352 = vmatpush.msra.mxu3 %v345_v40  ;;  %v906_v61 = vld [vmem:[%s1462_s1 + $0x38] sm:$0xff]  ;;  %v907_v3 = vld [vmem:[%s1462_s1 + $0x40] sm:$0xff]  ;;  %v549_v6 = vld [vmem:[#allocation2 + $0x1d0] sm:$0xff] }
  0x2b   : > { %900 = vmatmul.msk.f32.gmra.mxu0 %vm195_vm1, %v190_v4  ;;  %318 = vmatpush.msra.mxu2 %v299_v35  ;;  %v554_v63 = vld [vmem:[#allocation2 + $0x1f8] sm:$0xff]  ;;  %v548_v7 = vld [vmem:[#allocation2 + $0x1c8] sm:$0xff]  ;;  %v909_v10 = vld [vmem:[%s1462_s1 + $0x50] sm:$0xff] }
  0x2c   : > { %279 = vmatpush.msra.mxu1 %v258_v24  ;;  %353 = vmatpush.msra.mxu3 %v344_v42  ;;  %v550_v4 = vld [vmem:[#allocation2 + $0x1d8] sm:$0xff]  ;;  %v908_v8 = vld [vmem:[%s1462_s1 + $0x48] sm:$0xff]  ;;  %v547_v12 = vld [vmem:[#allocation2 + $0x1c0] sm:$0xff] }
  0x2d   : > { %319 = vmatpush.msra.mxu2 %v298_v37  ;;  %555 = vmatpush.msrb.mxu0 %v554_v63  ;;  %v546_v13 = vld [vmem:[#allocation2 + $0x1b8] sm:$0xff]  ;;  %v545_v15 = vld [vmem:[#allocation2 + $0x1b0] sm:$0xff]  ;;  %v592_v17 = vld [vmem:[#allocation2 + $0x268] sm:$0xff] }
  0x2e   : > { %280 = vmatpush.msra.mxu1 %v257_v25  ;;  %354 = vmatpush.msra.mxu3 %v343_v44  ;;  %v594_v14 = vld [vmem:[#allocation2 + $0x278] sm:$0xff]  ;;  %v593_v16 = vld [vmem:[#allocation2 + $0x270] sm:$0xff]  ;;  %v544_v18 = vld [vmem:[#allocation2 + $0x1a8] sm:$0xff] }
  0x2f   : > { %320 = vmatpush.msra.mxu2 %v297_v39  ;;  %v543_v19 = vld [vmem:[#allocation2 + $0x1a0] sm:$0xff]  ;;  %v542_v21 = vld [vmem:[#allocation2 + $0x198] sm:$0xff]  ;;  %v541_v23 = vld [vmem:[#allocation2 + $0x190] sm:$0xff] }
  0x30   : > { %281 = vmatpush.msra.mxu1 %v256_v27  ;;  %355 = vmatpush.msra.mxu3 %v342_v46  ;;  %v590_v22 = vld [vmem:[#allocation2 + $0x258] sm:$0xff]  ;;  %v589_v24 = vld [vmem:[#allocation2 + $0x250] sm:$0xff]  ;;  %v540_v25 = vld [vmem:[#allocation2 + $0x188] sm:$0xff] }
  0x31   : > { %321 = vmatpush.msra.mxu2 %v296_v41  ;;  %v539_v27 = vld [vmem:[#allocation2 + $0x180] sm:$0xff]  ;;  %v633_v32 = vld [vmem:[#allocation2 + $0x2f0] sm:$0xff]  ;;  %v584_v33 = vld [vmem:[#allocation2 + $0x228] sm:$0xff] }
  0x32   : > { %282 = vmatpush.msra.mxu1 %v255_v28  ;;  %356 = vmatpush.msra.mxu3 %v341_v48  ;;  %v587_v28 = vld [vmem:[#allocation2 + $0x240] sm:$0xff]  ;;  %v632_v34 = vld [vmem:[#allocation2 + $0x2e8] sm:$0xff]  ;;  %v582_v37 = vld [vmem:[#allocation2 + $0x218] sm:$0xff] }
  0x33   : > { %901 = vmatmul.msk.f32.gmra.mxu0 %vm195_vm1, %v191_v11  ;;  %322 = vmatpush.msra.mxu2 %v295_v43  ;;  %v910_v11 = vld [vmem:[%s1462_s1 + $0x58] sm:$0xff]  ;;  %v583_v35 = vld [vmem:[#allocation2 + $0x220] sm:$0xff]  ;;  %v581_v39 = vld [vmem:[#allocation2 + $0x210] sm:$0xff] }
  0x34   : > { %283 = vmatpush.msra.mxu1 %v254_v29  ;;  %357 = vmatpush.msra.mxu3 %v340_v49  ;;  %v586_v29 = vld [vmem:[#allocation2 + $0x238] sm:$0xff]  ;;  %v631_v36 = vld [vmem:[#allocation2 + $0x2e0] sm:$0xff]  ;;  %v629_v40 = vld [vmem:[#allocation2 + $0x2d0] sm:$0xff] }
  0x35   : > { %323 = vmatpush.msra.mxu2 %v294_v45  ;;  %v630_v38 = vld [vmem:[#allocation2 + $0x2d8] sm:$0xff]  ;;  %v580_v41 = vld [vmem:[#allocation2 + $0x208] sm:$0xff]  ;;  %v579_v43 = vld [vmem:[#allocation2 + $0x200] sm:$0xff] }
  0x36   : > { %284 = vmatpush.msra.mxu1 %v253_v31  ;;  %358 = vmatpush.msra.mxu3 %v339_v50  ;;  %v585_v31 = vld [vmem:[#allocation2 + $0x230] sm:$0xff]  ;;  %v628_v42 = vld [vmem:[#allocation2 + $0x2c8] sm:$0xff]  ;;  %v627_v44 = vld [vmem:[#allocation2 + $0x2c0] sm:$0xff] }
  0x37   : > { %324 = vmatpush.msra.mxu2 %v293_v47  ;;  %v626_v46 = vld [vmem:[#allocation2 + $0x2b8] sm:$0xff]  ;;  %v625_v47 = vld [vmem:[#allocation2 + $0x2b0] sm:$0xff]  ;;  %v624_v48 = vld [vmem:[#allocation2 + $0x2a8] sm:$0xff] }
  0x38   : > { %911 = vmatpush.msk.msrb.mxu1 %vm214_vm0, %v1209_v0  ;;  %359 = vmatpush.msra.mxu3 %v338_v51  ;;  %v553_v0 = vld [vmem:[#allocation2 + $0x1f0] sm:$0xff]  ;;  %v623_v49 = vld [vmem:[#allocation2 + $0x2a0] sm:$0xff]  ;;  %v622_v51 = vld [vmem:[#allocation2 + $0x298] sm:$0xff] }
  0x39   : > { %556 = vmatpush.msrb.mxu0 %v553_v0  ;;  %595 = vmatpush.msrb.mxu2 %v594_v14 }
  0x3a   : > { %517 = vmatpush.msrb.mxu1 %v1211_v1  ;;  %360 = vmatpush.msra.mxu3 %v337_v52  ;;  %v552_v1 = vld [vmem:[#allocation2 + $0x1e8] sm:$0xff]  ;;  %v621_v52 = vld [vmem:[#allocation2 + $0x290] sm:$0xff] }
  0x3b   : > { %902 = vmatmul.msk.f32.gmra.mxu0 %vm195_vm1, %v192_v20  ;;  %596 = vmatpush.msrb.mxu2 %v593_v16  ;;  %v591_v20 = vld [vmem:[#allocation2 + $0x260] sm:$0xff] }
  0x3c   : > { %518 = vmatpush.msrb.mxu1 %v1215_v2  ;;  %361 = vmatpush.msra.mxu3 %v336_v53  ;;  %v551_v2 = vld [vmem:[#allocation2 + $0x1e0] sm:$0xff]  ;;  %v620_v53 = vld [vmem:[#allocation2 + $0x288] sm:$0xff] }
  0x3d   : > { %557 = vmatpush.msrb.mxu0 %v552_v1  ;;  %597 = vmatpush.msrb.mxu2 %v592_v17 }
  0x3e   : > { %362 = vmatpush.msra.mxu3 %v335_v54  ;;  %v619_v54 = vld [vmem:[#allocation2 + $0x280] sm:$0xff] }
  0x3f   : > { %558 = vmatpush.msrb.mxu0 %v551_v2  ;;  %598 = vmatpush.msrb.mxu2 %v591_v20 }
  0x40   : > { %363 = vmatpush.msra.mxu3 %v334_v55 }
  0x41   : > { %559 = vmatpush.msrb.mxu0 %v550_v4  ;;  %599 = vmatpush.msrb.mxu2 %v590_v22 }
  0x42   : > { %364 = vmatpush.msra.mxu3 %v333_v56 }
  0x43   : > { %903 = vmatmul.msk.f32.gmra.mxu0 %vm195_vm1, %v193_v26  ;;  %v588_v26 = vld [vmem:[#allocation2 + $0x248] sm:$0xff]  ;;  %600 = vmatpush.msrb.mxu2 %v589_v24 }
  0x44   : > { %560 = vmatpush.msrb.mxu0 %v549_v6 }
  0x45   : > { %601 = vmatpush.msrb.mxu2 %v588_v26 }
  0x46   : > { %561 = vmatpush.msrb.mxu0 %v548_v7 }
  0x47   : > { %602 = vmatpush.msrb.mxu2 %v587_v28 }
  0x48   : > { %562 = vmatpush.msrb.mxu0 %v547_v12 }
  0x49   : > { %603 = vmatpush.msrb.mxu2 %v586_v29 }
  0x4a   : > { %563 = vmatpush.msrb.mxu0 %v546_v13 }
  0x4b   : > { %904 = vmatmul.msk.f32.gmra.mxu0 %vm195_vm1, %v194_v30  ;;  %v634_v30 = vld [vmem:[#allocation2 + $0x2f8] sm:$0xff]  ;;  %604 = vmatpush.msrb.mxu2 %v585_v31 }
  0x4c   : > { %564 = vmatpush.msrb.mxu0 %v545_v15  ;;  %635 = vmatpush.msrb.mxu3 %v634_v30 }
  0x4d   : > { %605 = vmatpush.msrb.mxu2 %v584_v33 }
  0x4e   : > { %565 = vmatpush.msrb.mxu0 %v544_v18  ;;  %636 = vmatpush.msrb.mxu3 %v633_v32 }
  0x4f   : > { %606 = vmatpush.msrb.mxu2 %v583_v35 }
  0x50   : > { %566 = vmatpush.msrb.mxu0 %v543_v19  ;;  %637 = vmatpush.msrb.mxu3 %v632_v34 }
  0x51   : > { %607 = vmatpush.msrb.mxu2 %v582_v37 }
  0x52   : > { %567 = vmatpush.msrb.mxu0 %v542_v21  ;;  %638 = vmatpush.msrb.mxu3 %v631_v36 }
  0x53   : > { %608 = vmatpush.msrb.mxu2 %v581_v39 }
  0x54   : > { %568 = vmatpush.msrb.mxu0 %v541_v23  ;;  %639 = vmatpush.msrb.mxu3 %v630_v38 }
  0x55   : > { %609 = vmatpush.msrb.mxu2 %v580_v41 }
  0x56   : > { %569 = vmatpush.msrb.mxu0 %v540_v25  ;;  %640 = vmatpush.msrb.mxu3 %v629_v40 }
  0x57   : > { %610 = vmatpush.msrb.mxu2 %v579_v43 }
  0x58   : > { %570 = vmatpush.msrb.mxu0 %v539_v27  ;;  %641 = vmatpush.msrb.mxu3 %v628_v42 }
  0x5a   : > { %642 = vmatpush.msrb.mxu3 %v627_v44 }
  0x5c   : > { %643 = vmatpush.msrb.mxu3 %v626_v46 }
  0x5e   : > { %644 = vmatpush.msrb.mxu3 %v625_v47 }
  0x60   : > { %645 = vmatpush.msrb.mxu3 %v624_v48 }
  0x62   : > { %646 = vmatpush.msrb.mxu3 %v623_v49 }
  0x64   : > { %647 = vmatpush.msrb.mxu3 %v622_v51 }
  0x66   : > { %648 = vmatpush.msrb.mxu3 %v621_v52 }
  0x68   : > { %649 = vmatpush.msrb.mxu3 %v620_v53 }
  0x6a   : > { %650 = vmatpush.msrb.mxu3 %v619_v54 }
  0xa0   : > { %v235_v57 = vpop.f32.mrf.mxu0 }
  0xa1   : > { %285 = vmatmul.f32.vlgmr.msra.gmra.mxu1 %v235_v57 }
  0xa8   : > { %v238_v58 = vpop.f32.mrf.mxu0 }
  0xa9   : > { %288 = vmatmul.f32.gmra.mxu1 %v238_v58 }
  0xb0   : > { %v241_v60 = vpop.f32.mrf.mxu0 }
  0xb1   : > { %325 = vmatmul.f32.vlgmr.msra.gmra.mxu2 %v241_v60  ;;  %912 = vmatmul.msk.f32.vlgmr.msrb.gmra.mxu1 %vm195_vm1, %v905_v59 }
  0xb8   : > { %v244_v62 = vpop.f32.mrf.mxu0 }
  0xb9   : > { %328 = vmatmul.f32.gmra.mxu2 %v244_v62  ;;  %913 = vmatmul.msk.f32.gmra.mxu1 %vm195_vm1, %v906_v61 }
  0xc0   : > { %v247_v5 = vpop.f32.mrf.mxu0 }
  0xc1   : > { %365 = vmatmul.f32.vlgmr.msra.gmra.mxu3 %v247_v5  ;;  %914 = vmatmul.msk.f32.gmra.mxu1 %vm195_vm1, %v907_v3 }
  0xc8   : > { %v250_v9 = vpop.f32.mrf.mxu0 }
  0xc9   : > { %368 = vmatmul.f32.gmra.mxu3 %v250_v9  ;;  %915 = vmatmul.msk.f32.gmra.mxu1 %vm195_vm1, %v908_v8 }
  0xd1   : > { %916 = vmatmul.msk.f32.gmra.mxu1 %vm195_vm1, %v909_v10 }
  0xd9   : > { %917 = vmatmul.msk.f32.gmra.mxu1 %vm195_vm1, %v910_v11 }
 0x11e   : > { %v1271_v45 = vpop.f32.mrf.mxu1 }
 0x126   : > { %v1273_v50 = vpop.f32.mrf.mxu1 }
 0x12e   : > { %v520_v55 = vpop.f32.mrf.mxu1 }
 0x12f   : > { %571 = vmatmul.f32.vlgmr.msrb.gmra.mxu0 %v520_v55 }
 0x134   : > { %v326_v62 = vpop.f32.mrf.mxu2 }
 0x135   : > { %v374_v0 = vsub.f32 %v1271_v45, %v326_v62  ;;  %v372_v29 = vadd.f32 %v326_v62, %v1271_v45 }
 0x136   : > { %v523_v56 = vpop.f32.mrf.mxu1 }
 0x137   : > { %574 = vmatmul.f32.gmra.mxu0 %v523_v56  ;;  %v376_v3 = vmul.f32 %v374_v0, %v374_v0 }
 0x13c   : > { %v329_v4 = vpop.f32.mrf.mxu2 }
 0x13d   : > { %v375_v7 = vsub.f32 %v1273_v50, %v329_v4  ;;  %v373_v41 = vadd.f32 %v329_v4, %v1273_v50 }
 0x13e   : > { %v526_v57 = vpop.f32.mrf.mxu1 }
 0x13f   : > { %611 = vmatmul.f32.vlgmr.msrb.gmra.mxu2 %v526_v57  ;;  %v377_v10 = vmul.f32 %v375_v7, %v375_v7 }
 0x144   : > { %v366_v61 = vpop.f32.mrf.mxu3 }
 0x145   : > { %v378_v63 = vmul.f32 %v366_v61, %v366_v61 }
 0x146   : > { %v529_v58 = vpop.f32.mrf.mxu1 }
 0x147   : > { %614 = vmatmul.f32.gmra.mxu2 %v529_v58  ;;  %v380_v1 = vmul.f32 4.0, %v378_v63 }
 0x149   : > { %v382_v5 = vadd.f32 %v380_v1, %v376_v3 }
 0x14b   : > { %v1277_v8 = vadd.f32 1e-06, %v382_v5 }
 0x14c   : > { %v369_v2 = vpop.f32.mrf.mxu3 }
 0x14d   : > { %v379_v6 = vmul.f32 %v369_v2, %v369_v2  ;;  %979 = vrsqrt.f32 %v1277_v8  ;;  %vm393_vm2 = vcmp.eq.f32.partialorder %v1277_v8, inf  ;;  %v396_v27 = vand.u32 2147483648, %v1277_v8 }
 0x14e   : > { %v532_v59 = vpop.f32.mrf.mxu1  ;;  %vm395_vm3 = vcmp.eq.f32.partialorder %v1277_v8, 0.0 }
 0x14f   : > { %651 = vmatmul.f32.vlgmr.msrb.gmra.mxu3 %v532_v59  ;;  %v381_v9 = vmul.f32 4.0, %v379_v6 }
 0x151   : > { %v383_v11 = vadd.f32 %v381_v9, %v377_v10 }
 0x153   : > { %v1280_v12 = vadd.f32 1e-06, %v383_v11  ;;  %v980_v13 = vpop.eup %979 }
 0x154   : > { %v387_v14 = vmul.f32 %v980_v13, %v1277_v8 }
 0x155   : > { %981 = vrsqrt.f32 %v1280_v12  ;;  %vm405_vm4 = vcmp.eq.f32.partialorder %v1280_v12, inf  ;;  %v408_v36 = vand.u32 2147483648, %v1280_v12  ;;  %vm407_vm5 = vcmp.eq.f32.partialorder %v1280_v12, 0.0 }
 0x156   : > { %v535_v60 = vpop.f32.mrf.mxu1  ;;  %v388_v15 = vmul.f32 %v980_v13, %v387_v14 }
 0x157   : > { %654 = vmatmul.f32.gmra.mxu3 %v535_v60 }
 0x158   : > { %v389_v17 = vmul.f32 0.5, %v388_v15 }
 0x15a   : > { %v390_v19 = vsub.f32 1.5, %v389_v17  ;;  %v450_v17 = vmul.f32 %v372_v29, %v372_v29 }
 0x15b   : > { %v982_v16 = vpop.eup %981 }
 0x15c   : > { %v399_v18 = vmul.f32 %v982_v16, %v1280_v12  ;;  %v391_v21 = vmul.f32 %v980_v13, %v390_v19 }
 0x15e   : > { %v400_v20 = vmul.f32 %v982_v16, %v399_v18  ;;  %v392_v23 = vmul.f32 %v391_v21, %v1277_v8 }
 0x160   : > { %v401_v22 = vmul.f32 0.5, %v400_v20  ;;  %v394_v26 = vsel %vm393_vm2, %v1277_v8, %v392_v23 }
 0x161   : > { %v397_v28 = vsel %vm395_vm3, %v396_v27, %v394_v26  ;;  %v451_v26 = vmul.f32 %v373_v41, %v373_v41 }
 0x162   : > { %v402_v24 = vsub.f32 1.5, %v401_v22  ;;  %v410_v32 = vadd.f32 %v397_v28, %v372_v29  ;;  %v414_v33 = vsub.f32 %v372_v29, %v397_v28  ;;  %v452_v22 = vadd.f32 %v450_v17, %v1277_v8 }
 0x164   : > { %v403_v25 = vmul.f32 %v982_v16, %v402_v24  ;;  %v1298_v37 = vmul.f32 0.5, %v410_v32  ;;  %v1300_v38 = vmul.f32 0.5, %v414_v33 }
 0x166   : > { %v404_v30 = vmul.f32 %v403_v25, %v1280_v12  ;;  %v1305_v46 = vand.u32 2147483647, %v1298_v37  ;;  %v1308_v47 = vand.u32 2147483647, %v1300_v38 }
 0x168   : > { %v406_v35 = vsel %vm405_vm4, %v1280_v12, %v404_v30  ;;  %v1320_v55 = vmax.f32 %v1305_v46, %v1308_v47  ;;  %v422_v14 = vmin.f32 %v1305_v46, %v1308_v47  ;;  %vm426_vm14 = vcmp.le.f32.partialorder %v1305_v46, %v1308_v47 }
 0x169   : > { %v409_v40 = vsel %vm407_vm5, %v408_v36, %v406_v35  ;;  %v453_v36 = vadd.f32 %v451_v26, %v1280_v12 }
 0x16a   : > { %v411_v44 = vadd.f32 %v409_v40, %v373_v41  ;;  %v415_v45 = vsub.f32 %v373_v41, %v409_v40  ;;  %vm430_vm6 = vcmp.ne.f32.partialorder %v1320_v55, 0.0 }
 0x16b   : > { %v432_v1 = vsel %vm430_vm6, %v1320_v55, 1.0 }
 0x16c   : > { %v1314_v54 = vmul.f32 0.5, %v411_v44  ;;  %v1316_v50 = vmul.f32 0.5, %v415_v45 }
 0x16e   : > { %v1325_v60 = vand.u32 2147483647, %v1314_v54  ;;  %v1328_v61 = vand.u32 2147483647, %v1316_v50 }
 0x170   : > { %v1336_v2 = vmax.f32 %v1325_v60, %v1328_v61  ;;  %v423_v29 = vmin.f32 %v1325_v60, %v1328_v61  ;;  %vm427_vm1 = vcmp.le.f32.partialorder %v1325_v60, %v1328_v61 }
 0x171   : > { %v429_v60 = vsel %vm427_vm1, %v1316_v50, %v1314_v54 }
 0x172   : > { %vm431_vm7 = vcmp.ne.f32.partialorder %v1336_v2, 0.0  ;;  %vm467_vm4 = vcmp.gt.f32.partialorder %v429_v60, 0.0 }
 0x173   : > { %v433_v9 = vsel %vm431_vm7, %v1336_v2, 1.0 }
 0x1ac   : > { %v572_v34 = vpop.f32.mrf.mxu0 }
 0x1b4   : > { %v1312_v53 = vpop.f32.mrf.mxu0 }
 0x1c2   : > { %v1292_v31 = vpop.f32.mrf.mxu2 }
 0x1c3   : > { %v660_v39 = vsub.f32 %v572_v34, %v1292_v31  ;;  %v658_v23 = vadd.f32 %v1292_v31, %v572_v34 }
 0x1c5   : > { %v662_v48 = vmul.f32 %v660_v39, %v660_v39  ;;  %v454_v39 = vmul.f32 0.5, %v452_v22  ;;  %v736_v40 = vmul.f32 %v658_v23, %v658_v23 }
 0x1ca   : > { %v1310_v51 = vpop.f32.mrf.mxu2 }
 0x1cb   : > { %v661_v56 = vsub.f32 %v1312_v53, %v1310_v51 }
 0x1cd   : > { %v663_v62 = vmul.f32 %v661_v56, %v661_v56  ;;  %v659_v56 = vadd.f32 %v1310_v51, %v1312_v53 }
 0x1cf   : > { %v737_v53 = vmul.f32 %v659_v56, %v659_v56 }
 0x1d2   : > { %v652_v42 = vpop.f32.mrf.mxu3 }
 0x1d3   : > { %v664_v43 = vmul.f32 %v652_v42, %v652_v42 }
 0x1d5   : > { %v666_v49 = vmul.f32 4.0, %v664_v43 }
 0x1d7   : > { %v668_v52 = vadd.f32 %v666_v49, %v662_v48  ;;  %v455_v49 = vmul.f32 0.5, %v453_v36 }
 0x1d9   : > { %v670_v57 = vadd.f32 1e-06, %v668_v52  ;;  %v456_v52 = vsub.f32 0.0, %v454_v39 }
 0x1da   : > { %v655_v58 = vpop.f32.mrf.mxu3 }
 0x1db   : > { %983 = vrsqrt.f32 %v670_v57  ;;  %v665_v59 = vmul.f32 %v655_v58, %v655_v58  ;;  %vm679_vm8 = vcmp.eq.f32.partialorder %v670_v57, inf  ;;  %v682_v21 = vand.u32 2147483648, %v670_v57 }
 0x1dc   : > { %985 = vrcp.f32 %v432_v1  ;;  %vm681_vm9 = vcmp.eq.f32.partialorder %v670_v57, 0.0  ;;  %v738_v48 = vadd.f32 %v736_v40, %v670_v57 }
 0x1dd   : > { %v667_v63 = vmul.f32 4.0, %v665_v59 }
 0x1df   : > { %v669_v0 = vadd.f32 %v667_v63, %v663_v62 }
 0x1e1   : > { %v984_v3 = vpop.eup %983  ;;  %v1338_v4 = vadd.f32 1e-06, %v669_v0 }
 0x1e2   : > { %v673_v5 = vmul.f32 %v984_v3, %v670_v57  ;;  %v986_v10 = vpop.eup %985 }
 0x1e3   : > { %987 = vrsqrt.f32 %v1338_v4  ;;  %v436_v18 = vmul.f32 %v986_v10, %v422_v14  ;;  %vm691_vm10 = vcmp.eq.f32.partialorder %v1338_v4, inf  ;;  %v694_v12 = vand.u32 2147483648, %v1338_v4 }
 0x1e4   : > { %v674_v6 = vmul.f32 %v984_v3, %v673_v5  ;;  %989 = vrcp.f32 %v433_v9  ;;  %vm693_vm11 = vcmp.eq.f32.partialorder %v1338_v4, 0.0  ;;  %v457_v5 = vsub.f32 0.0, %v455_v49 }
 0x1e5   : > { %v438_v27 = vmul.f32 %v436_v18, %v436_v18 }
 0x1e6   : > { %v675_v7 = vmul.f32 0.5, %v674_v6  ;;  %v458_v6 = vmul.f32 2.0, %v456_v52  ;;  %v459_v18 = vmul.f32 2.0, %v457_v5  ;;  %v428_v52 = vsel %vm426_vm14, %v1300_v38, %v1298_v37 }
 0x1e7   : > { %v440_v41 = vsub.f32 0.0, %v438_v27  ;;  %vm466_vm0 = vcmp.gt.f32.partialorder %v428_v52, 0.0 }
 0x1e8   : > { %v676_v11 = vsub.f32 1.5, %v675_v7  ;;  %v460_v17 = vmul.f32 1.442695, %v458_v6  ;;  %v462_v26 = vmul.f32 1.442695, %v459_v18 }
 0x1e9   : > { %v988_v13 = vpop.eup %987  ;;  %v442_v63 = vmul.f32 2.0, %v440_v41 }
 0x1ea   : > { %v677_v15 = vmul.f32 %v984_v3, %v676_v11  ;;  %v685_v16 = vmul.f32 %v988_v13, %v1338_v4  ;;  %v990_v30 = vpop.eup %989  ;;  %v740_v3 = vmul.f32 0.5, %v738_v48 }
 0x1eb   : > { %v437_v34 = vmul.f32 %v990_v30, %v423_v29  ;;  %v444_v11 = vmul.f32 1.442695, %v442_v63 }
 0x1ec   : > { %v678_v19 = vmul.f32 %v677_v15, %v670_v57  ;;  %v686_v20 = vmul.f32 %v988_v13, %v685_v16  ;;  %v739_v15 = vadd.f32 %v737_v53, %v1338_v4  ;;  %v742_v16 = vsub.f32 0.0, %v740_v3 }
 0x1ed   : > { %v439_v62 = vmul.f32 %v437_v34, %v437_v34 }
 0x1ee   : > { %v687_v24 = vmul.f32 0.5, %v686_v20  ;;  %v680_v25 = vsel %vm679_vm8, %v670_v57, %v678_v19 }
 0x1ef   : > { %v683_v28 = vsel %vm681_vm9, %v682_v21, %v680_v25  ;;  %v441_v10 = vsub.f32 0.0, %v439_v62 }
 0x1f0   : > { %v688_v32 = vsub.f32 1.5, %v687_v24  ;;  %v696_v33 = vadd.f32 %v683_v28, %v658_v23  ;;  %v700_v35 = vsub.f32 %v658_v23, %v683_v28  ;;  %v741_v23 = vmul.f32 0.5, %v739_v15 }
 0x1f1   : > { %v443_v20 = vmul.f32 2.0, %v441_v10  ;;  %v744_v24 = vmul.f32 2.0, %v742_v16 }
 0x1f2   : > { %v689_v8 = vmul.f32 %v988_v13, %v688_v32  ;;  %v1353_v42 = vmul.f32 0.5, %v696_v33  ;;  %v1355_v31 = vmul.f32 0.5, %v700_v35  ;;  %v743_v30 = vsub.f32 0.0, %v741_v23 }
 0x1f3   : > { %v446_v27 = vmul.f32 1.442695, %v443_v20  ;;  %v746_v32 = vmul.f32 1.442695, %v744_v24 }
 0x1f4   : > { %v690_v43 = vmul.f32 %v689_v8, %v1338_v4  ;;  %v1359_v44 = vand.u32 2147483647, %v1353_v42  ;;  %v1362_v45 = vand.u32 2147483647, %v1355_v31  ;;  %v745_v8 = vmul.f32 2.0, %v743_v30 }
 0x1f6   : > { %v692_v58 = vsel %vm691_vm10, %v1338_v4, %v690_v43  ;;  %v1372_v59 = vmax.f32 %v1359_v44, %v1362_v45  ;;  %v708_v21 = vmin.f32 %v1359_v44, %v1362_v45  ;;  %vm712_vm15 = vcmp.le.f32.partialorder %v1359_v44, %v1362_v45 }
 0x1f7   : > { %v695_v57 = vsel %vm693_vm11, %v694_v12, %v692_v58  ;;  %v748_v58 = vmul.f32 1.442695, %v745_v8  ;;  %v714_v37 = vsel %vm712_vm15, %v1355_v31, %v1353_v42 }
 0x1f8   : > { %v697_v0 = vadd.f32 %v695_v57, %v659_v56  ;;  %v701_v1 = vsub.f32 %v659_v56, %v695_v57  ;;  %vm716_vm12 = vcmp.ne.f32.partialorder %v1372_v59, 0.0  ;;  %vm752_vm2 = vcmp.gt.f32.partialorder %v714_v37, 0.0 }
 0x1f9   : > { %v718_v51 = vsel %vm716_vm12, %v1372_v59, 1.0 }
 0x1fa   : > { %v1378_v7 = vmul.f32 0.5, %v697_v0  ;;  %v1380_v9 = vmul.f32 0.5, %v701_v1  ;;  %991 = vrcp.f32 %v718_v51 }
 0x1fb   : > { %993 = vpow2.f32 %v444_v11 }
 0x1fc   : > { %v1383_v13 = vand.u32 2147483647, %v1378_v7  ;;  %v1386_v14 = vand.u32 2147483647, %v1380_v9  ;;  %995 = vpow2.f32 %v460_v17 }
 0x1fe   : > { %v1391_v19 = vmax.f32 %v1383_v13, %v1386_v14  ;;  %v709_v36 = vmin.f32 %v1383_v13, %v1386_v14  ;;  %vm713_vm3 = vcmp.le.f32.partialorder %v1383_v13, %v1386_v14 }
 0x1ff   : > { %v715_v51 = vsel %vm713_vm3, %v1380_v9, %v1378_v7 }
 0x200   : > { %v992_v22 = vpop.eup %991  ;;  %vm717_vm13 = vcmp.ne.f32.partialorder %v1391_v19, 0.0  ;;  %vm753_vm5 = vcmp.gt.f32.partialorder %v715_v51, 0.0 }
 0x201   : > { %v719_v4 = vsel %vm717_vm13, %v1391_v19, 1.0  ;;  %v722_v25 = vmul.f32 %v992_v22, %v708_v21  ;;  %v994_v35 = vpop.eup %993 }
 0x202   : > { %997 = vrcp.f32 %v719_v4  ;;  %v996_v29 = vpop.eup %995  ;;  %v448_v34 = vsel %vm430_vm6, %v994_v35, 0.0 }
 0x203   : > { %v724_v28 = vmul.f32 %v722_v25, %v722_v25  ;;  %999 = vpow2.f32 %v462_v26  ;;  %v464_v48 = vsub.f32 1.0, %v996_v29 }
 0x204   : > { %1001 = vpow2.f32 %v446_v27 }
 0x205   : > { %v726_v33 = vsub.f32 0.0, %v724_v28  ;;  %1003 = vpow2.f32 %v746_v32  ;;  %v468_v56 = vmul.f32 %v464_v48, %v448_v34 }
 0x207   : > { %v728_v39 = vmul.f32 2.0, %v726_v33  ;;  %v470_v47 = vsel %vm466_vm0, 0.0, %v468_v56 }
 0x208   : > { %v998_v40 = vpop.eup %997  ;;  %v472_v45 = vmul.f32 1.442695, %v470_v47 }
 0x209   : > { %v723_v41 = vmul.f32 %v998_v40, %v709_v36  ;;  %v730_v43 = vmul.f32 1.442695, %v728_v39  ;;  %v1000_v49 = vpop.eup %999 }
 0x20a   : > { %v1002_v62 = vpop.eup %1001  ;;  %v465_v3 = vsub.f32 1.0, %v1000_v49 }
 0x20b   : > { %v725_v12 = vmul.f32 %v723_v41, %v723_v41  ;;  %1005 = vpow2.f32 %v730_v43  ;;  %v1004_v57 = vpop.eup %1003  ;;  %v449_v0 = vsel %vm431_vm7, %v1002_v62, 0.0 }
 0x20c   : > { %1007 = vpow2.f32 %v748_v58  ;;  %v750_v1 = vsub.f32 1.0, %v1004_v57  ;;  %v469_v61 = vmul.f32 %v465_v3, %v449_v0 }
 0x20d   : > { %v727_v63 = vsub.f32 0.0, %v725_v12 }
 0x20e   : > { %v471_v31 = vsel %vm467_vm4, 0.0, %v469_v61 }
 0x20f   : > { %v729_v46 = vmul.f32 2.0, %v727_v63  ;;  %v474_v50 = vmul.f32 1.442695, %v471_v31 }
 0x211   : > { %v1006_v55 = vpop.eup %1005  ;;  %v732_v38 = vmul.f32 1.442695, %v729_v46 }
 0x212   : > { %v734_v44 = vsel %vm716_vm12, %v1006_v55, 0.0  ;;  %v1008_v2 = vpop.eup %1007 }
 0x213   : > { %1009 = vpow2.f32 %v732_v38  ;;  %v754_v5 = vmul.f32 %v750_v1, %v734_v44  ;;  %v751_v53 = vsub.f32 1.0, %v1008_v2 }
 0x214   : > { %1011 = vpow2.f32 %v472_v45 }
 0x215   : > { %v756_v6 = vsel %vm752_vm2, 0.0, %v754_v5 }
 0x216   : > { %v758_v42 = vmul.f32 1.442695, %v756_v6 }
 0x218   : > { %1013 = vpow2.f32 %v758_v42 }
 0x219   : > { %v1010_v59 = vpop.eup %1009  ;;  %1015 = vpow2.f32 %v474_v50 }
 0x21a   : > { %v735_v54 = vsel %vm717_vm13, %v1010_v59, 0.0  ;;  %v1012_v11 = vpop.eup %1011 }
 0x21b   : > { %v755_v10 = vmul.f32 %v751_v53, %v735_v54  ;;  %v476_v4 = vmul.f32 %v1012_v11, %v470_v47 }
 0x21d   : > { %v757_v15 = vsel %vm753_vm5, 0.0, %v755_v10 }
 0x21e   : > { %v1014_v13 = vpop.eup %1013  ;;  %v760_v14 = vmul.f32 1.442695, %v757_v15 }
 0x21f   : > { %v762_v16 = vadd.f32 %v1014_v13, %v1012_v11  ;;  %v1016_v17 = vpop.eup %1015  ;;  %v764_v22 = vmul.f32 %v1014_v13, %v756_v6 }
 0x220   : > { %1017 = vpow2.f32 %v760_v14  ;;  %v477_v34 = vmul.f32 %v1016_v17, %v471_v31 }
 0x221   : > { %1019 = vrcp.f32 %v762_v16  ;;  %v779_v21 = vand.u32 2147483648, %v762_v16  ;;  %v777_v24 = vand.u32 2147483647, %v762_v16  ;;  %vm773_vm7 = vweird.f32 %v762_v16 }
 0x222   : > { %v766_v28 = vadd.f32 %v764_v22, %v476_v4 }
 0x223   : > { %v780_v27 = vor.u32 1.1754944e-38, %v779_v21  ;;  %vm778_vm9 = vcmp.eq.f32.partialorder %v777_v24, 8.507059e+37 }
 0x226   : > { %v1018_v18 = vpop.eup %1017 }
 0x227   : > { %v1020_v7 = vpop.eup %1019  ;;  %v763_v9 = vadd.f32 %v1018_v18, %v1016_v17  ;;  %v765_v39 = vmul.f32 %v1018_v18, %v757_v15 }
 0x228   : > { %v769_v20 = vmul.f32 %v1020_v7, %v762_v16  ;;  %vm774_vm6 = vweird.f32 %v1020_v7 }
 0x229   : > { %1021 = vrcp.f32 %v763_v9  ;;  %vm775_vm8 = vmor %vm773_vm7, %vm774_vm6  ;;  %v794_v36 = vand.u32 2147483648, %v763_v9  ;;  %v792_v8 = vand.u32 2147483647, %v763_v9  ;;  %vm788_vm11 = vweird.f32 %v763_v9 }
 0x22a   : > { %v770_v19 = vsub.f32 1.0, %v769_v20  ;;  %v767_v48 = vadd.f32 %v765_v39, %v477_v34 }
 0x22b   : > { %v795_v43 = vor.u32 1.1754944e-38, %v794_v36  ;;  %vm793_vm13 = vcmp.eq.f32.partialorder %v792_v8, 8.507059e+37 }
 0x22c   : > { %v771_v23 = vmul.f32 %v1020_v7, %v770_v19 }
 0x22e   : > { %v772_v25 = vadd.f32 %v1020_v7, %v771_v23 }
 0x22f   : > { %v1022_v26 = vpop.eup %1021 }
 0x230   : > { %v776_v30 = vsel %vm775_vm8, %v1020_v7, %v772_v25  ;;  %v784_v32 = vmul.f32 %v1022_v26, %v763_v9  ;;  %vm789_vm10 = vweird.f32 %v1022_v26 }
 0x231   : > { %v781_v33 = vsel %vm778_vm9, %v780_v27, %v776_v30  ;;  %vm790_vm12 = vmor %vm788_vm11, %vm789_vm10 }
 0x232   : > { %v782_v35 = vmul.f32 %v781_v33, %v766_v28  ;;  %v785_v29 = vsub.f32 1.0, %v784_v32 }
 0x234   : > { %v786_v40 = vmul.f32 %v1022_v26, %v785_v29  ;;  %798 = vst [vmem:[%s180_s30] sm:$0xff] %v782_v35 }
 0x236   : > { %v787_v41 = vadd.f32 %v1022_v26, %v786_v40 }
 0x238   : > { %v791_v12 = vsel %vm790_vm12, %v1022_v26, %v787_v41 }
 0x239   : > { %v796_v49 = vsel %vm793_vm13, %v795_v43, %v791_v12 }
 0x23a   : > { %v797_v52 = vmul.f32 %v796_v49, %v767_v48 }
 0x23c   : > { %799 = vst [vmem:[%s180_s30 + $0x8] sm:$0xff] %v797_v52 }
 0x23d   : > { %1080 = shalt.err (!%p1077_p8)
}
 0x23e   : > { %s1124_s19 = smov 128   ;;  %s1125_s20 = smov 8  }
 0x23f   : > { %929 = dma.vmem_to_hbm [thread:$0]  (%p1184_p5), %s814_s4, 256, %s816_s16, %s801_s5, %s1124_s19, %s1124_s19, %s1125_s20  }
 0x240 PF: > { %p941_p9 = scmp.ge.s32.totalorder %s1119_s15, 2  ;;  %s830_s24 = sand.u32 1, %s1107_s12  }
 0x241   : > { %s831_s25 = scalar_lea.sflag [#allocation4], %s830_s24 }
 0x242   : > { %p936_p10 = pnand %p941_p9, %p1188_p6 }
 0x244   : > { %p937_p11 = pneg %p936_p10 }
 0x246   : > { %1102 = dma.done.wait (%p937_p11), %s831_s25, 256  }
 0x247   : > { %1104 = vsyncadd (%p937_p11), %s831_s25, 4294967040  ;;  %p14_p12 = scmp.ge.s32.totalorder %s1171_s18, 4   ;;  %s1467_s12 = smov %s1111_s13 }
 0x248   : > { %s1468_s13 = smov %s1115_s14  ;;  %s1469_s14 = smov %s1182_s21 }
 0x249   : > { %s1470_s15 = smov %s1171_s18  ;;  %16 = sbr.rel (!%p14_p12) target bundleno = 4 (0x4), region = 78 }
 0x24e   :  { %837 = vsyncpa [#allocation3], 1 }
 0x24f   :  { %839 = vsyncpa [#allocation3 + $0x1], 1 }
 0x250   :  { %840 = vsyncpa [#allocation4], 1 }
 0x251   :  { %842 = vsyncpa [#allocation4 + $0x1], 1 }

</bundles_post_ra>
